<compile_context>
chip_gen: v5e
topology: v5e:2x2
jax: 0.10.0
libtpu: 0.0.40
codegen_flags: <defaults>
</compile_context>

<pallas_src>
import functools
import math

import numpy as np
import jax
import jax.numpy as jnp
from jax import lax
from jax.experimental import pallas as pl
from jax.experimental.pallas import tpu as pltpu

_LANE = 128


def _round_up(x, m):
    return (x + m - 1) // m * m


def _grid_sample_kernel(in_ref, ref_ref, out_ref, *, M, Hr, Wr, Hr_pad):
    # in_ref : (1, 4, TP)       f32        channel-major FC inputs for one pixel tile
    # ref_ref: (M*Hr_pad, Wr)   bf16/f32   packed reference, rows zero-padded Hr -> Hr_pad
    # out_ref: (1, M, TP)       f32
    x = in_ref[0]                                               # (4, TP)
    tp = x.shape[-1]
    inv_pi = 1.0 / math.pi

    # --- ctrafo (CT='FC', dim=2) + channel swap [1, 0] -------------------------------
    # One fused arctan2 over a (2, TP) stack (halves the EUP + quadrant-select chain):
    #   row 0: grid_y = atan2(-x1, -x0)/pi    row 1: grid_x = atan2(-x3, -x2)/pi
    neg = -x
    num = jnp.concatenate([neg[1:2, :], neg[3:4, :]], axis=0)   # (2, TP)
    den = jnp.concatenate([neg[0:1, :], neg[2:3, :]], axis=0)   # (2, TP)
    g = jnp.arctan2(num, den) * inv_pi                          # (2, TP), in [-1, 1]

    # --- grid_sample unnormalization, align_corners=True -----------------------------
    iy = (g[0:1, :] + 1.0) * (0.5 * (Hr - 1))                   # (1, TP)
    ix = (g[1:2, :] + 1.0) * (0.5 * (Wr - 1))                   # (1, TP)

    # --- separable hat-function bilinear weights (row / column factors only) ---------
    # index columns from iota: no (K,1) HBM inputs, no integer divide.
    col = lax.broadcasted_iota(jnp.int32, (Wr, tp), 0).astype(jnp.float32)
    row = lax.broadcasted_iota(jnp.int32, (Hr_pad, tp), 0).astype(jnp.float32)
    wx = jnp.maximum(0.0, 1.0 - jnp.abs(col - ix))              # (Wr, TP)
    wy = jnp.maximum(0.0, 1.0 - jnp.abs(row - iy))              # (Hr_pad, TP), f32 for VPU
    wx = wx.astype(ref_ref.dtype)                               # match MXU operand dtype

    # --- single MXU matmul contracts the column axis ---------------------------------
    #   tmp[m*Hr_pad + h, p] = sum_w ref[m, h, w] * wx[w, p]
    tmp = lax.dot_general(
        ref_ref[...], wx,
        dimension_numbers=(((1,), (0,)), ((), ())),
        preferred_element_type=jnp.float32)                     # (M*Hr_pad, TP) f32

    # --- row-weight multiply + reduce over Hr on the VPU, one lane-dense store -------
    # Hr->Hr_pad padding rows of ref are zero, so the matching wy rows contribute nothing.
    rows = []
    for m in range(M):                                          # M is tiny & static
        seg = tmp[m * Hr_pad:(m + 1) * Hr_pad, :]               # 8-aligned static slice
        rows.append(jnp.sum(seg * wy, axis=0, keepdims=True))   # (1, TP)
    out_ref[0] = jnp.concatenate(rows, axis=0)                  # (M, TP)


def _vmem_bytes(tile_p, C, M, Hr_pad, Wr, ref_elem_bytes):
    """Conservative per-step VMEM estimate: double-buffered streamed tiles + resident
    packed reference + in-kernel temporaries."""
    f32 = 4
    rows_ref = M * Hr_pad
    in_tiles = 2 * C * tile_p * f32                        # double-buffered input tile
    out_tiles = 2 * M * tile_p * f32                       # double-buffered output tile
    ref_buf = 2 * _round_up(rows_ref, 8) * _round_up(Wr, _LANE) * ref_elem_bytes
    temporaries = tile_p * (
        _round_up(Wr, 8) * (f32 + ref_elem_bytes)          # wx (f32 + cast copy)
        + 2 * _round_up(Hr_pad, 8) * f32                   # wy + seg*wy product
        + rows_ref * f32                                   # matmul accumulator
        + 16 * f32)                                        # small 1/2-row temporaries
    return in_tiles + out_tiles + ref_buf + temporaries


def grid_sample_layer_forward(inputs, ref_img, tile_p=None, ref_dtype=jnp.bfloat16):
    """forward() of grid_sample_layer, dim=2, CT='FC', offsets=[].

    inputs : (B, 4, H, W) f32,  ref_img: (1, M, Hr, Wr) f32  ->  (B, M, H, W) f32.
    ref_dtype=jnp.float32 gives a full-precision (opt-in) MXU path.
    """
    B, C, H, W = inputs.shape
    assert C == 4, "dim=2, CT='FC' expects 4 input channels"
    _, M, Hr, Wr = ref_img.shape
    npix = H * W
    npix128 = _round_up(npix, _LANE)
    Hr_pad = _round_up(Hr, 8)
    ref_elem_bytes = jnp.dtype(ref_dtype).itemsize

    # ---- pixel-tile selection: largest lane-multiple tile under a VMEM budget --------
    # Budget keeps the working set well under v7x's 64 MiB physical / ~32 MiB scoped
    # VMEM; v5e/v6e (128 MiB) fit trivially and benefit from the larger tile.
    budget = 20 * 1024 * 1024
    if tile_p is None:
        cands = [c for c in (2048, 1024, 512, 256, _LANE) if c <= npix128]
        if npix128 <= 2048 and npix128 not in cands:
            cands.append(npix128)                 # exact padded size: no pad waste
        cands = sorted(set(cands), reverse=True)
        fitting = [c for c in cands
                   if npix128 % c == 0
                   and _vmem_bytes(c, C, M, Hr_pad, Wr, ref_elem_bytes) <= budget]
        tile_p = fitting[0] if fitting else _LANE
        # v7x has 2 TensorCores sharing the ("parallel","parallel") grid: keep >= 2
        # programs when possible rather than collapsing to a single giant tile.
        if B * (npix128 // tile_p) < 2:
            for c in fitting[1:]:
                if B * (npix128 // c) >= 2:
                    tile_p = c
                    break
    else:
        tile_p = max(_LANE, _round_up(min(int(tile_p), npix128), _LANE))

    npix_pad = _round_up(npix, tile_p)
    n_ptiles = npix_pad // tile_p

    # ---- glue reshapes / zero pads only (no transposes) ------------------------------
    inputs_cm = inputs.reshape(B, C, npix)                          # channel-major rows
    if npix_pad != npix:
        inputs_cm = jnp.pad(inputs_cm, ((0, 0), (0, 0), (0, npix_pad - npix)))

    ref = ref_img.reshape(M, Hr, Wr)
    if Hr_pad != Hr:                                                # zero rows -> zero weight
        ref = jnp.pad(ref, ((0, 0), (0, Hr_pad - Hr), (0, 0)))
    ref_packed = ref.reshape(M * Hr_pad, Wr).astype(ref_dtype)

    est = _vmem_bytes(tile_p, C, M, Hr_pad, Wr, ref_elem_bytes)
    vmem_limit = int(min(max(2 * est, 32 * 1024 * 1024), 48 * 1024 * 1024))

    kernel = functools.partial(_grid_sample_kernel, M=M, Hr=Hr, Wr=Wr, Hr_pad=Hr_pad)
    out = pl.pallas_call(
        kernel,
        out_shape=jax.ShapeDtypeStruct((B, M, npix_pad), jnp.float32),
        grid_spec=pltpu.PrefetchScalarGridSpec(
            num_scalar_prefetch=0,
            grid=(B, n_ptiles),
            in_specs=[
                pl.BlockSpec((1, C, tile_p), lambda b, p: (b, 0, p)),
                # Constant index_map -> packed reference stays resident in VMEM.
                # TODO(synk): pin to single-buffering (pipeline_mode=pl.Buffered(1)) once
                # verified in MLIR; the packed bf16 ref is small for the target sizes.
                pl.BlockSpec((M * Hr_pad, Wr), lambda b, p: (0, 0)),
            ],
            out_specs=pl.BlockSpec((1, M, tile_p), lambda b, p: (b, 0, p)),
        ),
        compiler_params=pltpu.CompilerParams(
            dimension_semantics=("parallel", "parallel"),
            vmem_limit_bytes=vmem_limit),
    )(inputs_cm, ref_packed)

    if npix_pad != npix:
        out = out[:, :, :npix]
    # Lane-dense kernel output reshapes straight back to NCHW; no transpose needed.
    return out.reshape(B, M, H, W)


def _reference_forward(inputs, ref_img):
    """Pure numpy reference of the PyTorch forward (bilinear, align_corners=True,
    padding_mode='zeros')."""
    inputs = np.asarray(inputs)
    ref_img = np.asarray(ref_img)
    B, _, H, W = inputs.shape
    _, M, Hr, Wr = ref_img.shape
    gy = np.arctan2(-inputs[:, 1], -inputs[:, 0]) / np.pi           # (B, H, W)
    gx = np.arctan2(-inputs[:, 3], -inputs[:, 2]) / np.pi
    ix = (gx + 1.0) * 0.5 * (Wr - 1)
    iy = (gy + 1.0) * 0.5 * (Hr - 1)
    x0 = np.floor(ix).astype(np.int64)
    y0 = np.floor(iy).astype(np.int64)
    fx = (ix - x0).astype(np.float32)
    fy = (iy - y0).astype(np.float32)

    def corner(m, yy, xx):
        valid = (yy >= 0) & (yy < Hr) & (xx >= 0) & (xx < Wr)
        yyc = np.clip(yy, 0, Hr - 1)
        xxc = np.clip(xx, 0, Wr - 1)
        v = ref_img[0, m][yyc, xxc]
        return np.where(valid, v, 0.0).astype(np.float32)

    out = np.zeros((B, M, H, W), np.float32)
    for m in range(M):
        out[:, m] = (corner(m, y0, x0) * (1 - fy) * (1 - fx)
                     + corner(m, y0, x0 + 1) * (1 - fy) * fx
                     + corner(m, y0 + 1, x0) * fy * (1 - fx)
                     + corner(m, y0 + 1, x0 + 1) * fy * fx)
    return out


if __name__ == "__main__":
    # Config 1: batch=2, 4 FC channels, 16x16 output, 4-modality 16x16 reference.
    # Config 2: non-square, M=3, Hr not a multiple of 8 (exercises the row padding).
    # Config 3: npix not a multiple of 128 (exercises the pixel-axis padding path).
    configs = [
        dict(B=2, H=16, W=16, M=4, Hr=16, Wr=16),
        dict(B=1, H=8, W=16, M=3, Hr=12, Wr=20),
        dict(B=2, H=10, W=12, M=2, Hr=9, Wr=10),
    ]

    key = jax.random.PRNGKey(0)
    for cfg in configs:
        key, k_in, k_ref = jax.random.split(key, 3)
        # dim=2, CT='FC' -> 2*dim = 4 input channels
        x = jax.random.normal(k_in, (cfg["B"], 4, cfg["H"], cfg["W"]), dtype=jnp.float32)
        # set_ref_img: batch must be 1 for the no-offsets forward path
        ref_img = jax.random.normal(
            k_ref, (1, cfg["M"], cfg["Hr"], cfg["Wr"]), dtype=jnp.float32)

        out = grid_sample_layer_forward(x, ref_img)
        out = jax.block_until_ready(out)

        expected = _reference_forward(x, ref_img)
        assert out.shape == expected.shape, (out.shape, expected.shape)
        # Tolerance accounts for the bf16 MXU path (ref + column weights in bf16,
        # f32 accumulation); indexing/semantic bugs would produce O(1) errors.
        np.testing.assert_allclose(np.asarray(out), expected, rtol=2e-2, atol=5e-2)

    print("KERNEL_OK")
</pallas_src>

<mosaic_0001>
module attributes {stable_mosaic.version = 11 : i64} {
  func.func @_grid_sample_kernel(%arg0: i32, %arg1: i32, %arg2: memref<1x4x256xf32, #tpu.memory_space<vmem>>, %arg3: memref<64x16xbf16, #tpu.memory_space<vmem>>, %arg4: memref<1x4x256xf32, #tpu.memory_space<vmem>>) attributes {dimension_semantics = [#tpu.dimension_semantics<parallel>, #tpu.dimension_semantics<parallel>], iteration_bounds = array<i64: 2, 1>, scalar_prefetch = 0 : i64, scratch_operands = 0 : i64, tpu.core_type = #tpu.core_type<tc>, window_params = [{transform_indices = @transform_0, window_bounds = array<i64: 1, 4, 256>}, {pipeline_mode = #tpu.pipeline_mode<synchronous>, transform_indices = @transform_1, window_bounds = array<i64: 64, 16>}, {transform_indices = @transform_2, window_bounds = array<i64: 1, 4, 256>}]} {
    %c0 = arith.constant 0 : index
    %c0_0 = arith.constant 0 : index
    %c0_1 = arith.constant 0 : index
    %0 = vector.load %arg2[%c0, %c0_0, %c0_1] : memref<1x4x256xf32, #tpu.memory_space<vmem>>, vector<1x4x256xf32>
    %1 = vector.shape_cast %0 : vector<1x4x256xf32> to vector<4x256xf32>
    %cst = arith.constant 0.000000e+00 : f32
    %2 = vector.broadcast %cst : f32 to vector<4x256xf32>
    %3 = arith.subf %2, %1 : vector<4x256xf32>
    %4 = vector.extract_strided_slice %3 {offsets = [1, 0], sizes = [1, 256], strides = [1, 1]} : vector<4x256xf32> to vector<1x256xf32>
    %5 = vector.extract_strided_slice %3 {offsets = [3, 0], sizes = [1, 256], strides = [1, 1]} : vector<4x256xf32> to vector<1x256xf32>
    %6 = tpu.concatenate %4, %5 in 0 : vector<1x256xf32>, vector<1x256xf32> -> vector<2x256xf32>
    %7 = vector.extract_strided_slice %3 {offsets = [0, 0], sizes = [1, 256], strides = [1, 1]} : vector<4x256xf32> to vector<1x256xf32>
    %8 = vector.extract_strided_slice %3 {offsets = [2, 0], sizes = [1, 256], strides = [1, 1]} : vector<4x256xf32> to vector<1x256xf32>
    %9 = tpu.concatenate %7, %8 in 0 : vector<1x256xf32>, vector<1x256xf32> -> vector<2x256xf32>
    %10 = math.atan2 %6, %9 : vector<2x256xf32>
    %cst_2 = arith.constant 0.318309873 : f32
    %11 = vector.broadcast %cst_2 : f32 to vector<2x256xf32>
    %12 = arith.mulf %10, %11 : vector<2x256xf32>
    %13 = vector.extract_strided_slice %12 {offsets = [0, 0], sizes = [1, 256], strides = [1, 1]} : vector<2x256xf32> to vector<1x256xf32>
    %cst_3 = arith.constant 1.000000e+00 : f32
    %14 = vector.broadcast %cst_3 : f32 to vector<1x256xf32>
    %15 = arith.addf %13, %14 : vector<1x256xf32>
    %cst_4 = arith.constant 7.500000e+00 : f32
    %16 = vector.broadcast %cst_4 : f32 to vector<1x256xf32>
    %17 = arith.mulf %15, %16 : vector<1x256xf32>
    %18 = vector.extract_strided_slice %12 {offsets = [1, 0], sizes = [1, 256], strides = [1, 1]} : vector<2x256xf32> to vector<1x256xf32>
    %cst_5 = arith.constant 1.000000e+00 : f32
    %19 = vector.broadcast %cst_5 : f32 to vector<1x256xf32>
    %20 = arith.addf %18, %19 : vector<1x256xf32>
    %cst_6 = arith.constant 7.500000e+00 : f32
    %21 = vector.broadcast %cst_6 : f32 to vector<1x256xf32>
    %22 = arith.mulf %20, %21 : vector<1x256xf32>
    %23 = tpu.iota {dimensions = array<i32: 0>} : vector<16x256xi32>
    %24 = arith.sitofp %23 : vector<16x256xi32> to vector<16x256xf32>
    %25 = tpu.iota {dimensions = array<i32: 0>} : vector<16x256xi32>
    %26 = arith.sitofp %25 : vector<16x256xi32> to vector<16x256xf32>
    %27 = vector.broadcast %22 : vector<1x256xf32> to vector<16x256xf32>
    %28 = arith.subf %24, %27 : vector<16x256xf32>
    %29 = math.absf %28 : vector<16x256xf32>
    %cst_7 = arith.constant 1.000000e+00 : f32
    %30 = vector.broadcast %cst_7 : f32 to vector<16x256xf32>
    %31 = arith.subf %30, %29 : vector<16x256xf32>
    %cst_8 = arith.constant 0.000000e+00 : f32
    %32 = vector.broadcast %cst_8 : f32 to vector<16x256xf32>
    %33 = arith.maximumf %32, %31 : vector<16x256xf32>
    %34 = vector.broadcast %17 : vector<1x256xf32> to vector<16x256xf32>
    %35 = arith.subf %26, %34 : vector<16x256xf32>
    %36 = math.absf %35 : vector<16x256xf32>
    %cst_9 = arith.constant 1.000000e+00 : f32
    %37 = vector.broadcast %cst_9 : f32 to vector<16x256xf32>
    %38 = arith.subf %37, %36 : vector<16x256xf32>
    %cst_10 = arith.constant 0.000000e+00 : f32
    %39 = vector.broadcast %cst_10 : f32 to vector<16x256xf32>
    %40 = arith.maximumf %39, %38 : vector<16x256xf32>
    %41 = arith.truncf %33 : vector<16x256xf32> to vector<16x256xbf16>
    %c0_11 = arith.constant 0 : index
    %c0_12 = arith.constant 0 : index
    %42 = vector.load %arg3[%c0_11, %c0_12] : memref<64x16xbf16, #tpu.memory_space<vmem>>, vector<64x16xbf16>
    %cst_13 = arith.constant dense<0.000000e+00> : vector<64x256xf32>
    %43 = tpu.matmul %42, %41, %cst_13 {dimension_numbers = #tpu.dot_dimension_numbers<[1], [0], [0], [1], [0, 0, 1, 1], [], []>} : vector<64x16xbf16>, vector<16x256xbf16>, vector<64x256xf32> -> vector<64x256xf32>
    %44 = vector.extract_strided_slice %43 {offsets = [0, 0], sizes = [16, 256], strides = [1, 1]} : vector<64x256xf32> to vector<16x256xf32>
    %45 = arith.mulf %44, %40 : vector<16x256xf32>
    %cst_14 = arith.constant dense<0.000000e+00> : vector<256xf32>
    %46 = vector.multi_reduction <add>, %45, %cst_14 [0] : vector<16x256xf32> to vector<256xf32>
    %47 = vector.shape_cast %46 : vector<256xf32> to vector<1x256xf32>
    %48 = vector.extract_strided_slice %43 {offsets = [16, 0], sizes = [16, 256], strides = [1, 1]} : vector<64x256xf32> to vector<16x256xf32>
    %49 = arith.mulf %48, %40 : vector<16x256xf32>
    %cst_15 = arith.constant dense<0.000000e+00> : vector<256xf32>
    %50 = vector.multi_reduction <add>, %49, %cst_15 [0] : vector<16x256xf32> to vector<256xf32>
    %51 = vector.shape_cast %50 : vector<256xf32> to vector<1x256xf32>
    %52 = vector.extract_strided_slice %43 {offsets = [32, 0], sizes = [16, 256], strides = [1, 1]} : vector<64x256xf32> to vector<16x256xf32>
    %53 = arith.mulf %52, %40 : vector<16x256xf32>
    %cst_16 = arith.constant dense<0.000000e+00> : vector<256xf32>
    %54 = vector.multi_reduction <add>, %53, %cst_16 [0] : vector<16x256xf32> to vector<256xf32>
    %55 = vector.shape_cast %54 : vector<256xf32> to vector<1x256xf32>
    %56 = vector.extract_strided_slice %43 {offsets = [48, 0], sizes = [16, 256], strides = [1, 1]} : vector<64x256xf32> to vector<16x256xf32>
    %57 = arith.mulf %56, %40 : vector<16x256xf32>
    %cst_17 = arith.constant dense<0.000000e+00> : vector<256xf32>
    %58 = vector.multi_reduction <add>, %57, %cst_17 [0] : vector<16x256xf32> to vector<256xf32>
    %59 = vector.shape_cast %58 : vector<256xf32> to vector<1x256xf32>
    %60 = tpu.concatenate %47, %51, %55, %59 in 0 : vector<1x256xf32>, vector<1x256xf32>, vector<1x256xf32>, vector<1x256xf32> -> vector<4x256xf32>
    %c0_18 = arith.constant 0 : index
    %c0_19 = arith.constant 0 : index
    %c0_20 = arith.constant 0 : index
    %61 = vector.load %arg4[%c0_18, %c0_19, %c0_20] : memref<1x4x256xf32, #tpu.memory_space<vmem>>, vector<1x4x256xf32>
    %62 = vector.shape_cast %61 : vector<1x4x256xf32> to vector<4x256xf32>
    %63 = vector.shape_cast %60 : vector<4x256xf32> to vector<1x4x256xf32>
    tpu.vector_store %arg4[%c0_18, %c0_19, %c0_20], %63 {strides = array<i32>} : memref<1x4x256xf32, #tpu.memory_space<vmem>>, vector<1x4x256xf32>,
    return
  }
  func.func @transform_0(%arg0: i32, %arg1: i32) -> (i32, i32, i32) {
    %c0_i32 = arith.constant 0 : i32
    %c0_i32_0 = arith.constant 0 : i32
    return %arg0, %c0_i32, %arg1 : i32, i32, i32
  }
  func.func @transform_1(%arg0: i32, %arg1: i32) -> (i32, i32) {
    %c0_i32 = arith.constant 0 : i32
    %c0_i32_0 = arith.constant 0 : i32
    %c0_i32_1 = arith.constant 0 : i32
    return %c0_i32, %c0_i32_0 : i32, i32
  }
  func.func @transform_2(%arg0: i32, %arg1: i32) -> (i32, i32, i32) {
    %c0_i32 = arith.constant 0 : i32
    %c0_i32_0 = arith.constant 0 : i32
    return %arg0, %c0_i32, %arg1 : i32, i32, i32
  }
}

</mosaic_0001>

<bundles_post_ra>
// kernel: tpu_custom_call.1
= control target key start
LH: loop header
LB: loop body
LE: loop exit
PB: predicated region body
PF: predicated region fallthrough
CT: control target
= control target key end

     0   :  { %7 = vsyncpa [#allocation3], 0  ;;  %s1049_s0 = inlined_call_operand.vmem [shape: f32[2,4,256], index: 0, kind: input, shape index: {}]   ;;  %s1050_s1 = inlined_call_operand.vmem [shape: bf16[64,16], index: 1, kind: input, shape index: {}]   ;;  %s1051_s2 = inlined_call_operand.hbm [shape: f32[2,4,256], index: 2, kind: output, shape index: {}]  }
   0x1   :  { %9 = vsyncpa [#allocation3 + $0x1], 0  ;;  %s851_s9 = smov 0   ;;  %s853_s10 = smov 0  }
   0x2   :  { %s855_s11 = smov 0   ;;  %s857_s12 = smov 0  }
   0x3   :  { %s859_s13 = smov 0   ;;  %s861_s14 = smov 0  }
   0x4 LB: > { %s648_s15 = sadd.s32 4294967295, %s832_s14   ;;  %s649_s16 = sadd.s32 4294967294, %s832_s14   ;;  %s832_s14 = sphi %s861_s14, %s15_s14   ;;  %s828_s13 = sphi %s859_s13, %s1066_s13   ;;  %s824_s12 = sphi %s857_s12, %s1065_s12   ;;  %s820_s11 = sphi %s855_s11, %s1064_s11   ;;  %s816_s10 = sphi %s853_s10, %s1063_s10   ;;  %s812_s9 = sphi %s851_s9, %s1062_s9  }
   0x5   : > { %s27_s17 = sadd.s32 1, %s828_s13  ;;  %s85_s18 = sadd.s32 1, %s820_s11 }
   0x6   : > { %p29_p0 = scmp.ge.s32.totalorder %s27_s17, 2  ;;  %p95_p1 = scmp.ne.s32.totalorder %s820_s11, %s816_s10 }
   0x7   : > { %p96_p2 = scmp.eq.s32.totalorder %s648_s15, 1  ;;  %p101_p3 = scmp.ne.s32.totalorder %s816_s10, %s812_s9 }
   0x8   : > { %s1068_s17 = smov (%p29_p0, %s27_s17), 0  ;;  %p102_p5 = scmp.eq.s32.totalorder %s649_s16, 1 }
   0x9   : > { %p891_p4 = por %p96_p2, %p95_p1  ;;  %s80_s20 = ssub.s32 %s828_s13, %s1068_s17 }
   0xa   : > { %p652_p6 = scmp.ge.s32.totalorder %s832_s14, 1  ;;  %p83_p7 = scmp.eq.s32.totalorder %s80_s20, 0 }
   0xb   : > { %p898_p8 = por %p102_p5, %p101_p3  ;;  %p136_p9 = scmp.lt.s32.totalorder %s832_s14, 3 }
   0xc   : > { %s904_s22 = scalar_select %p83_p7, %s820_s11, %s85_s18  }
   0xd   : > { %p137_p10 = pnand %p652_p6, %p136_p9 }
   0xe   : > { %p163_p11 = scmp.lt.s32.totalorder (!%p137_p10), %s824_s12, 1  ;;  %s159_s8 = sand.u32 (!%p137_p10), 1, %s816_s10  }
   0xf   : > { %140 = sbr.rel (%p137_p10) target bundleno = 303 (0x12f), region = 28  ;;  %s1006_s15 = sshll.u32 (!%p137_p10), %s159_s8, 3 }
  0x10   : > { %s690_s16 = sshll.u32 (!%p137_p10), %s824_s12, 3  ;;  %s554_s26 = scalar_lea.sflag (!%p137_p10), [#allocation3], %s159_s8 }
  0x11   : > { %s774_s3 = scalar_lea.hbm (!%p137_p10), %s1051_s2, 16 }
  0x14   : > { %s164_s23 = scalar_select %p163_p11, %s824_s12, 1  ;;  %vm185_vm0 = vcmask 1040384  }
  0x15   : > { %s161_s12 = scalar_lea.vmem [#allocation2], %s1006_s15 }
  0x16   : > { %s685_s24 = sshll.u32 %s164_s23, 3  ;;  %s567_s23 = scalar_lea.hbm %s1051_s2, %s690_s16 }
  0x17   : > { %s170_s27 = scalar_lea.vmem %s1049_s0, %s685_s24  ;;  %s569_s24 = sshll.u32 %s161_s12, 4  ;;  %s570_s24 = int_to_ptr.vmem [resolvable:$true] %s569_s24 }
  0x18   : > { %v174_v0 = vld [vmem:[%s170_s27] sm:$0xff]  ;;  %s571_s25 = sshll.u32 %s567_s23, 4  ;;  %s572_s25 = int_to_ptr.hbm [resolvable:$true] %s571_s25 }
  0x19   : > { %v175_v1 = vsub.f32 0.0, %v174_v0  ;;  %s768_s27 = sshra.s32 %s572_s25, 4  ;;  %s769_s27 = int_to_ptr.hbm [resolvable:$true] %s768_s27 }
  0x1a   : > { %s770_s28 = scalar_lea.hbm %s769_s27, 8  ;;  %p775_p1 = scmp.lt.s32.totalorder %s769_s27, %s1051_s2 }
  0x1b   : > { %v177_v2 = vperm.slane %v175_v1, 1  ;;  %v181_v3 = vperm.slane %v175_v1, 3  ;;  %v188_v4 = vperm.slane %v175_v1, 0  ;;  %v192_v5 = vperm.slane %v175_v1, 2  ;;  %p771_p12 = scmp.ne.s32.totalorder %s769_s27, %s770_s28  ;;  %p776_p2 = scmp.lt.s32.totalorder %s774_s3, %s770_s28 }
  0x1c   : > { %v178_v6 = vperm.slane %v175_v1, 5  ;;  %v182_v7 = vperm.slane %v175_v1, 7  ;;  %v189_v8 = vperm.slane %v175_v1, 4  ;;  %v193_v9 = vperm.slane %v175_v1, 6 }
  0x1d   : > { %v912_v10 = vsel %vm185_vm0, %v177_v2, %v181_v3  ;;  %v915_v11 = vsel %vm185_vm0, %v188_v4, %v192_v5  ;;  %p772_p13 = pnand %p771_p12, %p891_p4  ;;  %p777_p3 = por %p776_p2, %p775_p1 }
  0x1e   : > { %v918_v12 = vand.u32 2147483647, %v915_v11  ;;  %v921_v13 = vand.u32 2147483647, %v912_v10  ;;  %v924_v14 = vsel %vm185_vm0, %v178_v6, %v182_v7  ;;  %v927_v15 = vsel %vm185_vm0, %v189_v8, %v193_v9 }
  0x1f   : > { %v930_v16 = vand.u32 2147483647, %v927_v15  ;;  %v933_v17 = vand.u32 2147483647, %v924_v14  ;;  %vm245_vm9 = vcmp.ne.f32.partialorder %v915_v11, %v915_v11  ;;  %vm246_vm10 = vcmp.ne.f32.partialorder %v912_v10, %v912_v10  ;;  %p773_p0 = pneg %p772_p13 }
  0x20   : > { %v201_v18 = vmax.f32 %v918_v12, %v921_v13  ;;  %v200_v33 = vmin.f32 %v918_v12, %v921_v13  ;;  %vm947_vm11 = vmor %vm245_vm9, %vm246_vm10  ;;  %vm251_vm12 = vcmp.eq.s32.totalorder %v918_v12, inf  ;;  %vm252_vm13 = vcmp.eq.s32.totalorder %v921_v13, inf }
  0x21   : > { %v261_v19 = vmax.f32 %v930_v16, %v933_v17  ;;  %v260_v36 = vmin.f32 %v930_v16, %v933_v17  ;;  %vm953_vm14 = vmand %vm251_vm12, %vm252_vm13  ;;  %vm305_vm15 = vcmp.ne.f32.partialorder %v927_v15, %v927_v15  ;;  %vm295_vm9 = vcmp.gt.f32.partialorder %v933_v17, %v930_v16  ;;  %p778_p5 = pnand %p777_p3, %p773_p0 }
  0x22   : > { %750 = vrcp.f32 %v201_v18  ;;  %vm207_vm1 = vweird.f32 %v201_v18  ;;  %v213_v23 = vand.u32 2147483648, %v201_v18  ;;  %v211_v26 = vand.u32 2147483647, %v201_v18 }
  0x23   : > { %752 = vrcp.f32 %v261_v19  ;;  %v273_v27 = vand.u32 2147483648, %v261_v19  ;;  %vm267_vm3 = vweird.f32 %v261_v19  ;;  %v271_v29 = vand.u32 2147483647, %v261_v19 }
  0x24   : > { %v214_v31 = vor.u32 1.1754944e-38, %v213_v23  ;;  %vm212_vm6 = vcmp.eq.f32.partialorder %v211_v26, 8.507059e+37  ;;  %vm243_vm10 = vcmp.eq.f32.partialorder %v912_v10, 0.0  ;;  %vm301_vm12 = vcmp.lt.s32.totalorder %v927_v15, 0 }
  0x25   : > { %v274_v35 = vor.u32 1.1754944e-38, %v273_v27  ;;  %vm272_vm8 = vcmp.eq.f32.partialorder %v271_v29, 8.507059e+37  ;;  %vm298_vm13 = vcmp.lt.f32.partialorder %v927_v15, 0.0 }
  0x28   : > { %v751_v20 = vpop.eup %750 }
  0x29   : > { %v753_v21 = vpop.eup %752  ;;  %v203_v22 = vmul.f32 %v751_v20, %v201_v18  ;;  %vm208_vm2 = vweird.f32 %v751_v20 }
  0x2a   : > { %v263_v24 = vmul.f32 %v753_v21, %v261_v19  ;;  %vm268_vm4 = vweird.f32 %v753_v21  ;;  %vm209_vm5 = vmor %vm207_vm1, %vm208_vm2  ;;  %vm306_vm1 = vcmp.ne.f32.partialorder %v924_v14, %v924_v14  ;;  %vm311_vm2 = vcmp.eq.s32.totalorder %v930_v16, inf }
  0x2b   : > { %v204_v25 = vsub.f32 1.0, %v203_v22  ;;  %vm269_vm7 = vmor %vm267_vm3, %vm268_vm4  ;;  %vm312_vm4 = vcmp.eq.s32.totalorder %v933_v17, inf  ;;  %v256_v17 = vand.u32 2147483648, %v912_v10 }
  0x2c   : > { %v264_v28 = vsub.f32 1.0, %v263_v24  ;;  %vm962_vm3 = vmor %vm305_vm15, %vm306_vm1  ;;  %vm303_vm15 = vcmp.eq.f32.partialorder %v924_v14, 0.0  ;;  %vm543_vm1 = vcmask 1042432  }
  0x2d   : > { %v205_v30 = vmul.f32 %v751_v20, %v204_v25 }
  0x2e   : > { %v265_v32 = vmul.f32 %v753_v21, %v264_v28 }
  0x2f   : > { %v206_v34 = vadd.f32 %v751_v20, %v205_v30  ;;  %v834_v30 = vmov 0.0  }
  0x30   : > { %v266_v37 = vadd.f32 %v753_v21, %v265_v32 }
  0x31   : > { %v210_v38 = vsel %vm209_vm5, %v751_v20, %v206_v34  ;;  %vm967_vm5 = vmand %vm311_vm2, %vm312_vm4  ;;  %vm549_vm2 = vcmask 1043456  }
  0x32   : > { %v215_v39 = vsel %vm212_vm6, %v214_v31, %v210_v38  ;;  %v270_v40 = vsel %vm269_vm7, %v753_v21, %v266_v37  ;;  %vm235_vm6 = vcmp.gt.f32.partialorder %v921_v13, %v918_v12  ;;  %vm241_vm7 = vcmp.lt.s32.totalorder %v915_v11, 0 }
  0x33   : > { %v216_v41 = vmul.f32 %v215_v39, %v200_v33  ;;  %v275_v42 = vsel %vm272_vm8, %v274_v35, %v270_v40  ;;  %vm238_vm8 = vcmp.lt.f32.partialorder %v915_v11, 0.0  ;;  %v242_v31 = vsel %vm241_vm7, 3.1415927, %v834_v30 }
  0x34   : > { %v276_v43 = vmul.f32 %v275_v42, %v260_v36  ;;  %v835_v12 = vmov 0.7853982   ;;  %v324_v35 = vlaneseq  ;;  %v302_v38 = vsel %vm301_vm12, 3.1415927, %v834_v30 }
  0x35   : > { %v217_v44 = vmul.f32 %v216_v41, %v216_v41  ;;  %v250_v13 = vsel %vm238_vm8, 2.3561945, %v835_v12 }
  0x36   : > { %v277_v45 = vmul.f32 %v276_v43, %v276_v43 }
  0x37   : > { %v218_v46 = vmul.f32 0.002785687, %v217_v44 }
  0x38   : > { %v278_v47 = vmul.f32 0.002785687, %v277_v45 }
  0x39   : > { %v219_v48 = vadd.f32 -0.015866, %v218_v46 }
  0x3a   : > { %v279_v49 = vadd.f32 -0.015866, %v278_v47 }
  0x3b   : > { %v220_v50 = vmul.f32 %v219_v48, %v217_v44 }
  0x3c   : > { %v280_v51 = vmul.f32 %v279_v49, %v277_v45 }
  0x3d   : > { %v221_v52 = vadd.f32 0.04247222, %v220_v50 }
  0x3e   : > { %v281_v56 = vadd.f32 0.04247222, %v280_v51 }
  0x3f   : > { %v222_v53 = vmul.f32 %v221_v52, %v217_v44 }
  0x40   : > { %v282_v58 = vmul.f32 %v281_v56, %v277_v45 }
  0x41   : > { %v223_v57 = vadd.f32 -0.074975304, %v222_v53 }
  0x42   : > { %v283_v61 = vadd.f32 -0.074975304, %v282_v58 }
  0x43   : > { %v224_v59 = vmul.f32 %v223_v57, %v217_v44 }
  0x44   : > { %v284_v0 = vmul.f32 %v283_v61, %v277_v45 }
  0x45   : > { %v225_v63 = vadd.f32 0.1064488, %v224_v59 }
  0x46   : > { %v285_v2 = vadd.f32 0.1064488, %v284_v0 }
  0x47   : > { %v226_v1 = vmul.f32 %v225_v63, %v217_v44 }
  0x48   : > { %v286_v4 = vmul.f32 %v285_v2, %v277_v45 }
  0x49   : > { %v227_v3 = vadd.f32 -0.14207031, %v226_v1 }
  0x4a   : > { %v287_v6 = vadd.f32 -0.14207031, %v286_v4 }
  0x4b   : > { %v228_v5 = vmul.f32 %v227_v3, %v217_v44 }
  0x4c   : > { %v288_v8 = vmul.f32 %v287_v6, %v277_v45 }
  0x4d   : > { %v229_v7 = vadd.f32 0.19993454, %v228_v5 }
  0x4e   : > { %v289_v18 = vadd.f32 0.19993454, %v288_v8 }
  0x4f   : > { %v230_v9 = vmul.f32 %v229_v7, %v217_v44 }
  0x50   : > { %v290_v20 = vmul.f32 %v289_v18, %v277_v45 }
  0x51   : > { %v231_v19 = vadd.f32 -0.33333147, %v230_v9 }
  0x52   : > { %v291_v22 = vadd.f32 -0.33333147, %v290_v20  ;;  %v686_v20 = vld [vmem:[%s1050_s1] sm:$0xff] }
  0x53   : > { %v232_v21 = vmul.f32 %v231_v19, %v217_v44 }
  0x54   : > { %v292_v24 = vmul.f32 %v291_v22, %v277_v45  ;;  %v316_v45 = vand.u32 2147483648, %v924_v14 }
  0x55   : > { %v233_v23 = vmul.f32 %v232_v21, %v216_v41  ;;  %v688_v21 = vld [vmem:[%s1050_s1 + $0x10] sm:$0xff] }
  0x56   : > { %v293_v26 = vmul.f32 %v292_v24, %v276_v43  ;;  %v689_v24 = vld [vmem:[%s1050_s1 + $0x18] sm:$0xff] }
  0x57   : > { %v234_v25 = vadd.f32 %v233_v23, %v216_v41  ;;  %v310_v41 = vsel %vm298_vm13, 2.3561945, %v835_v12  ;;  %v687_v23 = vld [vmem:[%s1050_s1 + $0x8] sm:$0xff] }
  0x58   : > { %v294_v28 = vadd.f32 %v293_v26, %v276_v43  ;;  %v325_v43 = vshrl.u32 %v324_v35, 7 }
  0x59   : > { %v236_v27 = vsub.f32 1.5707964, %v234_v25 }
  0x5a   : > { %v296_v33 = vsub.f32 1.5707964, %v294_v28  ;;  %v326_v10 = vadd.s32 8, %v325_v43  ;;  %v327_v54 = vcvt.s32.f32 %v325_v43 }
  0x5b   : > { %v237_v29 = vsel %vm235_vm6, %v236_v27, %v234_v25 }
  0x5c   : > { %v239_v32 = vsub.f32 3.1415927, %v237_v29  ;;  %v297_v36 = vsel %vm295_vm9, %v296_v33, %v294_v28  ;;  %v328_v55 = vcvt.s32.f32 %v326_v10 }
  0x5d   : > { %v299_v11 = vsub.f32 3.1415927, %v297_v36 }
  0x5e   : > { %v240_v34 = vsel %vm238_vm8, %v239_v32, %v237_v29 }
  0x5f   : > { %v244_v37 = vsel %vm243_vm10, %v242_v31, %v240_v34  ;;  %v300_v40 = vsel %vm298_vm13, %v299_v11, %v297_v36 }
  0x60   : > { %v248_v16 = vsel %vm947_vm11, nan, %v244_v37  ;;  %v304_v44 = vsel %vm303_vm15, %v302_v38, %v300_v40  ;;  %vm395_vm11 = vcmask 130048  }
  0x61   : > { %v254_v39 = vsel %vm953_vm14, %v250_v13, %v248_v16  ;;  %v308_v15 = vsel %vm962_vm3, nan, %v304_v44  ;;  %vm540_vm14 = vcmask 1041408  }
  0x62   : > { %v255_v42 = vand.u32 2147483647, %v254_v39  ;;  %v314_v47 = vsel %vm967_vm5, %v310_v41, %v308_v15 }
  0x63   : > { %v315_v48 = vand.u32 2147483647, %v314_v47 }
  0x64   : > { %v257_v46 = vor.u32 %v256_v17, %v255_v42 }
  0x65   : > { %v317_v50 = vor.u32 %v316_v45, %v315_v48 }
  0x66   : > { %v318_v49 = vmul.f32 0.31830987, %v257_v46 }
  0x67   : > { %v319_v52 = vmul.f32 0.31830987, %v317_v50 }
  0x68   : > { %v320_v51 = vadd.f32 1.0, %v318_v49 }
  0x69   : > { %v321_v56 = vadd.f32 1.0, %v319_v52 }
  0x6a   : > { %v322_v53 = vmul.f32 7.5, %v320_v51 }
  0x6b   : > { %v323_v58 = vmul.f32 7.5, %v321_v56 }
  0x6c   : > { %v329_v57 = vperm.slane %v322_v53, 1  ;;  %v347_v26 = vperm.slane %v322_v53, 0 }
  0x6d   : > { %v330_v61 = vperm.slane %v323_v58, 1  ;;  %v348_v25 = vperm.slane %v323_v58, 0 }
  0x6e   : > { %v331_v59 = vsub.f32 %v327_v54, %v329_v57  ;;  %v333_v60 = vsub.f32 %v328_v55, %v329_v57  ;;  %v351_v30 = vsub.f32 %v328_v55, %v347_v26  ;;  %v349_v31 = vsub.f32 %v327_v54, %v347_v26 }
  0x6f   : > { %v332_v0 = vsub.f32 %v327_v54, %v330_v61  ;;  %v334_v62 = vsub.f32 %v328_v55, %v330_v61  ;;  %v352_v27 = vsub.f32 %v328_v55, %v348_v25  ;;  %v350_v29 = vsub.f32 %v327_v54, %v348_v25 }
  0x70   : > { %v335_v14 = vand.u32 2147483647, %v331_v59  ;;  %v337_v63 = vand.u32 2147483647, %v333_v60  ;;  %v355_v13 = vand.u32 2147483647, %v351_v30 }
  0x71   : > { %v336_v3 = vand.u32 2147483647, %v332_v0  ;;  %v338_v4 = vand.u32 2147483647, %v334_v62  ;;  %v356_v33 = vand.u32 2147483647, %v352_v27 }
  0x72   : > { %v339_v1 = vsub.f32 1.0, %v335_v14  ;;  %v341_v2 = vsub.f32 1.0, %v337_v63  ;;  %v354_v12 = vand.u32 2147483647, %v350_v29  ;;  %v353_v34 = vand.u32 2147483647, %v349_v31 }
  0x73   : > { %v340_v7 = vsub.f32 1.0, %v336_v3  ;;  %v342_v8 = vsub.f32 1.0, %v338_v4  ;;  %v360_v36 = vsub.f32 1.0, %v356_v33  ;;  %v359_v38 = vsub.f32 1.0, %v355_v13 }
  0x74   : > { %v343_v5 = vmax.f32 %v339_v1, 0.0  ;;  %v345_v6 = vmax.f32 %v341_v2, 0.0  ;;  %v358_v37 = vsub.f32 1.0, %v354_v12  ;;  %v357_v17 = vsub.f32 1.0, %v353_v34 }
  0x75   : > { %v344_v18 = vmax.f32 %v340_v7, 0.0  ;;  %v346_v19 = vmax.f32 %v342_v8, 0.0  ;;  %v364_v39 = vmax.f32 %v360_v36, 0.0  ;;  %v363_v42 = vmax.f32 %v359_v38, 0.0 }
  0x76   : > { %v365_v9 = vpack.c.bf16 %v345_v6, %v343_v5  ;;  %v362_v41 = vmax.f32 %v358_v37, 0.0  ;;  %v361_v43 = vmax.f32 %v357_v17, 0.0 }
  0x77   : > { %v366_v22 = vpack.c.bf16 %v346_v19, %v344_v18 }
  0x78   : > { %415 = vmatpush.bf16.msra.mxu0 %v365_v9  ;;  %691 = vmatpush.bf16.msra.mxu2 %v365_v9 }
  0x79   : > { %444 = vmatpush.bf16.msra.mxu1 %v366_v22  ;;  %692 = vmatpush.bf16.msra.mxu3 %v366_v22 }
  0x7b   : > { %672 = vmatmul.msk.bf16.vlgmr.msra.gmra.mxu0 %vm395_vm11, %v686_v20  ;;  %674 = vmatmul.msk.bf16.vlgmr.msra.gmra.mxu2 %vm395_vm11, %v688_v21 }
  0x7c   : > { %676 = vmatmul.msk.bf16.vlgmr.msra.gmra.mxu1 %vm395_vm11, %v686_v20  ;;  %678 = vmatmul.msk.bf16.vlgmr.msra.gmra.mxu3 %vm395_vm11, %v688_v21 }
  0x8b   : > { %673 = vmatmul.msk.bf16.gmra.mxu0 %vm395_vm11, %v687_v23  ;;  %675 = vmatmul.msk.bf16.gmra.mxu2 %vm395_vm11, %v689_v24 }
  0x8c   : > { %677 = vmatmul.msk.bf16.gmra.mxu1 %vm395_vm11, %v687_v23  ;;  %679 = vmatmul.msk.bf16.gmra.mxu3 %vm395_vm11, %v689_v24 }
  0xf8   : > { %v417_v28 = vpop.f32.mrf.mxu0 }
  0xf9   : > { %v446_v32 = vpop.f32.mrf.mxu1  ;;  %v466_v49 = vmul.f32 %v417_v28, %v361_v43 }
  0xfa   : > { %v467_v45 = vmul.f32 %v446_v32, %v362_v41 }
  0xfe   : > { %v427_v35 = vpop.f32.mrf.mxu2 }
  0xff   : > { %v456_v11 = vpop.f32.mrf.mxu3  ;;  %v502_v55 = vmul.f32 %v427_v35, %v361_v43 }
 0x100   : > { %v419_v16 = vpop.f32.mrf.mxu0  ;;  %v503_v52 = vmul.f32 %v456_v11, %v362_v41 }
 0x101   : > { %v448_v40 = vpop.f32.mrf.mxu1  ;;  %v468_v46 = vmul.f32 %v419_v16, %v363_v42 }
 0x102   : > { %v469_v44 = vmul.f32 %v448_v40, %v364_v39 }
 0x103   : > { %v470_v53 = vadd.f32 %v468_v46, %v466_v49 }
 0x104   : > { %v477_v10 = vadd.f32 %v469_v44, %v467_v45 }
 0x105   : > { %v471_v59 = vrot.slane %v470_v53, 4 }
 0x106   : > { %v429_v15 = vpop.f32.mrf.mxu2  ;;  %v478_v56 = vrot.slane %v477_v10, 4 }
 0x107   : > { %v458_v47 = vpop.f32.mrf.mxu3  ;;  %v504_v54 = vmul.f32 %v429_v15, %v363_v42  ;;  %v472_v5 = vadd.f32 %v471_v59, %v470_v53 }
 0x108   : > { %v422_v48 = vpop.f32.mrf.mxu0  ;;  %v505_v50 = vmul.f32 %v458_v47, %v364_v39  ;;  %v479_v63 = vadd.f32 %v478_v56, %v477_v10 }
 0x109   : > { %v451_v51 = vpop.f32.mrf.mxu1  ;;  %v506_v60 = vadd.f32 %v504_v54, %v502_v55  ;;  %v484_v62 = vmul.f32 %v422_v48, %v361_v43  ;;  %v473_v24 = vrot.slane %v472_v5, 2 }
 0x10a   : > { %v513_v57 = vadd.f32 %v505_v50, %v503_v52  ;;  %v485_v3 = vmul.f32 %v451_v51, %v362_v41  ;;  %v480_v9 = vrot.slane %v479_v63, 2 }
 0x10b   : > { %v507_v6 = vrot.slane %v506_v60, 4  ;;  %v474_v11 = vadd.f32 %v473_v24, %v472_v5 }
 0x10c   : > { %v514_v0 = vrot.slane %v513_v57, 4  ;;  %v481_v32 = vadd.f32 %v480_v9, %v479_v63 }
 0x10d   : > { %v508_v25 = vadd.f32 %v507_v6, %v506_v60  ;;  %v475_v45 = vrot.slane %v474_v11, 1 }
 0x10e   : > { %v432_v58 = vpop.f32.mrf.mxu2  ;;  %v515_v18 = vadd.f32 %v514_v0, %v513_v57  ;;  %v482_v40 = vrot.slane %v481_v32, 1 }
 0x10f   : > { %v461_v61 = vpop.f32.mrf.mxu3  ;;  %v520_v21 = vmul.f32 %v432_v58, %v361_v43  ;;  %v509_v36 = vrot.slane %v508_v25, 2  ;;  %v476_v54 = vadd.f32 %v475_v45, %v474_v11 }
 0x110   : > { %v424_v14 = vpop.f32.mrf.mxu0  ;;  %v521_v28 = vmul.f32 %v461_v61, %v362_v41  ;;  %v516_v33 = vrot.slane %v515_v18, 2  ;;  %v483_v10 = vadd.f32 %v482_v40, %v481_v32 }
 0x111   : > { %v486_v1 = vmul.f32 %v424_v14, %v363_v42  ;;  %v453_v2 = vpop.f32.mrf.mxu1  ;;  %v510_v15 = vadd.f32 %v509_v36, %v508_v25 }
 0x112   : > { %v487_v4 = vmul.f32 %v453_v2, %v364_v39  ;;  %v517_v41 = vadd.f32 %v516_v33, %v515_v18 }
 0x113   : > { %v488_v7 = vadd.f32 %v486_v1, %v484_v62  ;;  %v511_v53 = vrot.slane %v510_v15, 1 }
 0x114   : > { %v495_v8 = vadd.f32 %v487_v4, %v485_v3  ;;  %v518_v49 = vrot.slane %v517_v41, 1 }
 0x115   : > { %v489_v19 = vrot.slane %v488_v7, 4  ;;  %v512_v61 = vadd.f32 %v511_v53, %v510_v15 }
 0x116   : > { %v434_v20 = vpop.f32.mrf.mxu2  ;;  %v496_v22 = vrot.slane %v495_v8, 4  ;;  %v519_v57 = vadd.f32 %v518_v49, %v517_v41 }
 0x117   : > { %v522_v23 = vmul.f32 %v434_v20, %v363_v42  ;;  %v490_v26 = vadd.f32 %v489_v19, %v488_v7  ;;  %v463_v27 = vpop.f32.mrf.mxu3 }
 0x118   : > { %v497_v29 = vadd.f32 %v496_v22, %v495_v8  ;;  %v523_v31 = vmul.f32 %v463_v27, %v364_v39 }
 0x119   : > { %v524_v30 = vadd.f32 %v522_v23, %v520_v21  ;;  %v491_v12 = vrot.slane %v490_v26, 2 }
 0x11a   : > { %v498_v13 = vrot.slane %v497_v29, 2  ;;  %v531_v35 = vadd.f32 %v523_v31, %v521_v28 }
 0x11b   : > { %v525_v34 = vrot.slane %v524_v30, 4  ;;  %v492_v37 = vadd.f32 %v491_v12, %v490_v26 }
 0x11c   : > { %v499_v38 = vadd.f32 %v498_v13, %v497_v29  ;;  %v532_v17 = vrot.slane %v531_v35, 4 }
 0x11d   : > { %v526_v16 = vadd.f32 %v525_v34, %v524_v30  ;;  %v493_v42 = vrot.slane %v492_v37, 1 }
 0x11e   : > { %v500_v43 = vrot.slane %v499_v38, 1  ;;  %v533_v44 = vadd.f32 %v532_v17, %v531_v35 }
 0x11f   : > { %v527_v39 = vrot.slane %v526_v16, 2  ;;  %v494_v50 = vadd.f32 %v493_v42, %v492_v37 }
 0x120   : > { %v501_v46 = vadd.f32 %v500_v43, %v499_v38  ;;  %v534_v48 = vrot.slane %v533_v44, 2 }
 0x121   : > { %v528_v47 = vadd.f32 %v527_v39, %v526_v16  ;;  %v538_v60 = vsel %vm185_vm0, %v476_v54, %v494_v50 }
 0x122   : > { %v535_v52 = vadd.f32 %v534_v48, %v533_v44  ;;  %v539_v55 = vsel %vm185_vm0, %v483_v10, %v501_v46  ;;  %v541_v0 = vsel %vm540_vm14, %v538_v60, %v512_v61 }
 0x123   : > { %v529_v51 = vrot.slane %v528_v47, 1  ;;  %v542_v14 = vsel %vm540_vm14, %v539_v55, %v519_v57 }
 0x124   : > { %v536_v56 = vrot.slane %v535_v52, 1 }
 0x125   : > { %v530_v58 = vadd.f32 %v529_v51, %v528_v47 }
 0x126   : > { %v537_v59 = vadd.f32 %v536_v56, %v535_v52 }
 0x127   : > { %v544_v1 = vsel %vm543_vm1, %v541_v0, %v530_v58 }
 0x128   : > { %v545_v63 = vsel %vm543_vm1, %v542_v14, %v537_v59 }
 0x129   : > { %v548_v62 = vrot.slane %v545_v63, 4 }
 0x12b   : > { %v550_v2 = vsel %vm549_vm2, %v544_v1, %v548_v62 }
 0x12c   : > { %552 = vst [vmem:[%s161_s12] sm:$0xff] %v550_v2 }
 0x12d   : > { %781 = shalt.err (!%p778_p5)
}
 0x12e   : > { %693 = dma.vmem_to_hbm [thread:$0]  (%p891_p4), %s570_s24, 128, %s572_s25, %s554_s26  }
 0x12f PF: > { %p699_p6 = scmp.ge.s32.totalorder %s832_s14, 2  ;;  %s583_s6 = sand.u32 1, %s812_s9  }
 0x130   : > { %s584_s7 = scalar_lea.sflag [#allocation3], %s583_s6 }
 0x131   : > { %p696_p7 = pnand %p699_p6, %p898_p8 }
 0x133   : > { %p697_p9 = pneg %p696_p7 }
 0x135   : > { %807 = dma.done.wait (%p697_p9), %s584_s7, 128  }
 0x136   : > { %809 = vsyncadd (%p697_p9), %s584_s7, 4294967168  ;;  %s15_s14 = sadd.s32 1, %s832_s14   ;;  %s1062_s9 = smov %s816_s10 }
 0x137   : > { %p12_p10 = scmp.ge.s32.totalorder %s15_s14, 4   ;;  %s1063_s10 = smov %s820_s11 }
 0x138   : > { %s1064_s11 = smov %s904_s22  ;;  %s1065_s12 = smov %s828_s13 }
 0x139   : > { %s1066_s13 = smov %s1068_s17  ;;  %14 = sbr.rel (!%p12_p10) target bundleno = 4 (0x4), region = 63 }
 0x13e   :  { %590 = vsyncpa [#allocation3], 1 }
 0x13f   :  { %592 = vsyncpa [#allocation3 + $0x1], 1 }

</bundles_post_ra>
